<compile_context>
chip_gen: v6e
topology: v6e:2x2x1
jax: 0.10.0
libtpu: 0.0.40
codegen_flags: <defaults>
</compile_context>

<pallas_src>
import jax
import jax.numpy as jnp
from jax.experimental import pallas as pl
from jax.experimental.pallas import tpu as pltpu

EPS = 1e-5
LANE = 128


def _round_up(x, m):
    return (x + m - 1) // m * m


# ----------------------------- pass 1: batch statistics -----------------------------
def _stats_kernel(p_ref, w_ref, stats_ref):
    # p: (TM, K) bf16, w: (K, Cp) bf16, stats: (8, Cp) f32 resident accumulator
    # (row 0 = per-channel sum, row 1 = per-channel sum of squares).
    @pl.when(pl.program_id(0) == 0)
    def _():
        stats_ref[...] = jnp.zeros_like(stats_ref)

    y = jnp.dot(p_ref[...], w_ref[...], preferred_element_type=jnp.float32)  # (TM, Cp)
    s = jnp.sum(y, axis=0, keepdims=True)             # (1, Cp)  -> XLU slot
    sq = jnp.sum(y * y, axis=0, keepdims=True)        # (1, Cp)
    pad = jnp.zeros((stats_ref.shape[0] - 2, y.shape[1]), jnp.float32)
    stats_ref[...] += jnp.concatenate([s, sq, pad], axis=0)   # full-tile unmasked store


# ----------------------------- pass 2: normalize -------------------------------------
def _norm_kernel(p_ref, w_ref, scale_ref, shift_ref, o_ref):
    y = jnp.dot(p_ref[...], w_ref[...], preferred_element_type=jnp.float32)  # (TM, Cp)
    o_ref[...] = (y * scale_ref[...] + shift_ref[...]).astype(o_ref.dtype)


def downsample_d(x_nchw, conv_w, gamma, beta, *, tm=512):
    """Forward of DownsampleD.  x: (N, Cin, H, W); conv_w: (Cout, Cin, 2, 2)."""
    N, Cin, H, W = x_nchw.shape
    Cout = conv_w.shape[0]
    assert H % 2 == 0 and W % 2 == 0
    Ho, Wo = H // 2, W // 2
    M, K = N * Ho * Wo, Cin * 4
    Cp = _round_up(Cout, LANE)                  # lane-dense output channels
    TM = min(tm, _round_up(M, 8))               # M-tile, multiple of 8 sublanes
    Mp = _round_up(M, TM)
    grid_m = Mp // TM

    # --- glue: space-to-depth into the (M, K) patch matrix ---------------------------
    # patches[n, i, j, ci, kh, kw] = x[n, ci, 2i+kh, 2j+kw]; zero-pad rows to Mp
    # (zero rows contribute nothing to sum/sumsq; stats divide by the true M).
    # TODO(synk): with an NHWC boundary layout the transposes here and at the end (one
    # extra HBM pass each way) could be folded into the BlockSpec DMA instead.
    patches = x_nchw.reshape(N, Cin, Ho, 2, Wo, 2)
    patches = patches.transpose(0, 2, 4, 1, 3, 5).reshape(M, K)
    patches = jnp.pad(patches, ((0, Mp - M), (0, 0))).astype(jnp.bfloat16)

    # w_mat[ci*4 + kh*2 + kw, co] = conv_w[co, ci, kh, kw], zero-padded to Cp columns.
    w_mat = conv_w.transpose(1, 2, 3, 0).reshape(K, Cout).astype(jnp.float32)
    w_mat = jnp.pad(w_mat, ((0, 0), (0, Cp - Cout))).astype(jnp.bfloat16)
    gamma_p = jnp.pad(gamma.astype(jnp.float32), (0, Cp - Cout))
    beta_p = jnp.pad(beta.astype(jnp.float32), (0, Cp - Cout))

    bytes_patches = Mp * K * 2
    flops = 2 * Mp * K * Cp
    vmem_limit = 32 * 1024 * 1024   # safe on v5e (128 MiB), v6e (128 MiB), v7x (64 MiB)

    # --- pass 1: per-channel sum / sum-of-squares ------------------------------------
    stats = pl.pallas_call(
        _stats_kernel,
        out_shape=jax.ShapeDtypeStruct((8, Cp), jnp.float32),
        grid=(grid_m,),
        in_specs=[
            pl.BlockSpec((TM, K), lambda i: (i, 0)),
            pl.BlockSpec((K, Cp), lambda i: (0, 0)),
        ],
        out_specs=pl.BlockSpec((8, Cp), lambda i: (0, 0)),   # resident accumulator
        compiler_params=pltpu.CompilerParams(
            dimension_semantics=("arbitrary",),
            vmem_limit_bytes=vmem_limit),
        cost_estimate=pl.CostEstimate(
            flops=flops, transcendentals=0,
            bytes_accessed=bytes_patches + K * Cp * 2 + 8 * Cp * 4),
    )(patches, w_mat)

    # Fold BN (training mode, biased variance) into one scale/shift per channel (tiny,
    # done in plain JAX between the two passes).
    ssum, ssq = stats[0], stats[1]                           # (Cp,)
    mean = ssum / M
    var = jnp.maximum(ssq / M - mean * mean, 0.0)
    inv_std = jax.lax.rsqrt(var + EPS)
    scale = (inv_std * gamma_p).reshape(1, Cp)
    shift = (beta_p - mean * inv_std * gamma_p).reshape(1, Cp)

    # --- pass 2: recompute the cheap matmul per tile and normalize --------------------
    out_flat = pl.pallas_call(
        _norm_kernel,
        out_shape=jax.ShapeDtypeStruct((Mp, Cp), jnp.float32),
        grid=(grid_m,),
        in_specs=[
            pl.BlockSpec((TM, K), lambda i: (i, 0)),
            pl.BlockSpec((K, Cp), lambda i: (0, 0)),
            pl.BlockSpec((1, Cp), lambda i: (0, 0)),
            pl.BlockSpec((1, Cp), lambda i: (0, 0)),
        ],
        out_specs=pl.BlockSpec((TM, Cp), lambda i: (i, 0)),
        compiler_params=pltpu.CompilerParams(
            dimension_semantics=("parallel",),   # shards M across v7x's 2 TensorCores
            vmem_limit_bytes=vmem_limit),
        cost_estimate=pl.CostEstimate(
            flops=flops, transcendentals=0,
            bytes_accessed=bytes_patches + K * Cp * 2 + Mp * Cp * 4),
    )(patches, w_mat, scale, shift)

    # back to NCHW: (M, Cout) -> (N, Ho, Wo, Cout) -> (N, Cout, Ho, Wo)
    out = out_flat[:M, :Cout].reshape(N, Ho, Wo, Cout)
    return out.transpose(0, 3, 1, 2)
    # TODO(synk): PyTorch BatchNorm2d in training mode also updates running_mean /
    # running_var (unbiased); only the forward activation is produced here.


def _reference(x_nchw, conv_w, gamma, beta):
    # Pure-JAX reference: conv2d k=2 s=2 no bias, then training-mode BN (biased var).
    y = jax.lax.conv_general_dilated(
        x_nchw.astype(jnp.float32), conv_w.astype(jnp.float32),
        window_strides=(2, 2), padding="VALID",
        dimension_numbers=("NCHW", "OIHW", "NCHW"))
    mean = jnp.mean(y, axis=(0, 2, 3), keepdims=True)
    var = jnp.mean((y - mean) ** 2, axis=(0, 2, 3), keepdims=True)
    return (y - mean) * jax.lax.rsqrt(var + EPS) * gamma.reshape(1, -1, 1, 1) \
        + beta.reshape(1, -1, 1, 1)


if __name__ == "__main__":
    key = jax.random.PRNGKey(0)
    k_x, k_w, k_g, k_b = jax.random.split(key, 4)

    N, Cin, Cout, H, W = 2, 4, 4, 16, 16
    x = jax.random.normal(k_x, (N, Cin, H, W), dtype=jnp.float32)
    conv_w = jax.random.normal(k_w, (Cout, Cin, 2, 2), dtype=jnp.float32) * 0.1
    gamma = 1.0 + 0.1 * jax.random.normal(k_g, (Cout,), dtype=jnp.float32)
    beta = 0.1 * jax.random.normal(k_b, (Cout,), dtype=jnp.float32)

    out = jax.block_until_ready(downsample_d(x, conv_w, gamma, beta))
    assert out.shape == (N, Cout, H // 2, W // 2)

    # Reference with the same bf16 rounding of the MXU operands (tight check of the
    # kernel's math), and the pure-f32 reference (semantics check, bf16 tolerance).
    ref_bf16 = jax.block_until_ready(_reference(
        x.astype(jnp.bfloat16).astype(jnp.float32),
        conv_w.astype(jnp.bfloat16).astype(jnp.float32), gamma, beta))
    ref_f32 = jax.block_until_ready(_reference(x, conv_w, gamma, beta))

    assert float(jnp.max(jnp.abs(out - ref_bf16))) < 2e-3
    assert float(jnp.max(jnp.abs(out - ref_f32))) < 5e-2

    print("KERNEL_OK")
</pallas_src>

<mosaic_0001>
module attributes {stable_mosaic.version = 11 : i64} {
  func.func @_stats_kernel(%arg0: i32, %arg1: memref<128x16xbf16, #tpu.memory_space<vmem>>, %arg2: memref<16x128xbf16, #tpu.memory_space<vmem>>, %arg3: memref<8x128xf32, #tpu.memory_space<vmem>>) attributes {dimension_semantics = [#tpu.dimension_semantics<arbitrary>], iteration_bounds = array<i64: 1>, scalar_prefetch = 0 : i64, scratch_operands = 0 : i64, tpu.core_type = #tpu.core_type<tc>, window_params = [{transform_indices = @transform_0, window_bounds = array<i64: 128, 16>}, {pipeline_mode = #tpu.pipeline_mode<synchronous>, transform_indices = @transform_1, window_bounds = array<i64: 16, 128>}, {pipeline_mode = #tpu.pipeline_mode<synchronous>, transform_indices = @transform_2, window_bounds = array<i64: 8, 128>}]} {
    %c0_i32 = arith.constant 0 : i32
    %0 = arith.cmpi eq, %arg0, %c0_i32 : i32
    %1 = arith.extui %0 : i1 to i32
    %c0_i32_0 = arith.constant 0 : i32
    %2 = arith.cmpi ne, %1, %c0_i32_0 : i32
    scf.if %2 {
      %cst_11 = arith.constant 0.000000e+00 : f32
      %16 = vector.broadcast %cst_11 : f32 to vector<8x128xf32>
      %c0_12 = arith.constant 0 : index
      %c0_13 = arith.constant 0 : index
      %17 = vector.load %arg3[%c0_12, %c0_13] : memref<8x128xf32, #tpu.memory_space<vmem>>, vector<8x128xf32>
      tpu.vector_store %arg3[%c0_12, %c0_13], %16 {strides = array<i32>} : memref<8x128xf32, #tpu.memory_space<vmem>>, vector<8x128xf32>,
    } else {
    }
    %c0 = arith.constant 0 : index
    %c0_1 = arith.constant 0 : index
    %3 = vector.load %arg1[%c0, %c0_1] : memref<128x16xbf16, #tpu.memory_space<vmem>>, vector<128x16xbf16>
    %c0_2 = arith.constant 0 : index
    %c0_3 = arith.constant 0 : index
    %4 = vector.load %arg2[%c0_2, %c0_3] : memref<16x128xbf16, #tpu.memory_space<vmem>>, vector<16x128xbf16>
    %cst = arith.constant dense<0.000000e+00> : vector<128x128xf32>
    %5 = tpu.matmul %3, %4, %cst {dimension_numbers = #tpu.dot_dimension_numbers<[1], [0], [0], [1], [0, 0, 1, 1], [], []>} : vector<128x16xbf16>, vector<16x128xbf16>, vector<128x128xf32> -> vector<128x128xf32>
    %cst_4 = arith.constant dense<0.000000e+00> : vector<128xf32>
    %6 = vector.multi_reduction <add>, %5, %cst_4 [0] : vector<128x128xf32> to vector<128xf32>
    %7 = vector.shape_cast %6 : vector<128xf32> to vector<1x128xf32>
    %8 = arith.mulf %5, %5 : vector<128x128xf32>
    %cst_5 = arith.constant dense<0.000000e+00> : vector<128xf32>
    %9 = vector.multi_reduction <add>, %8, %cst_5 [0] : vector<128x128xf32> to vector<128xf32>
    %10 = vector.shape_cast %9 : vector<128xf32> to vector<1x128xf32>
    %cst_6 = arith.constant 0.000000e+00 : f32
    %11 = vector.broadcast %cst_6 : f32 to vector<6x128xf32>
    %c0_7 = arith.constant 0 : index
    %c0_8 = arith.constant 0 : index
    %12 = vector.load %arg3[%c0_7, %c0_8] : memref<8x128xf32, #tpu.memory_space<vmem>>, vector<8x128xf32>
    %13 = tpu.concatenate %7, %10, %11 in 0 : vector<1x128xf32>, vector<1x128xf32>, vector<6x128xf32> -> vector<8x128xf32>
    %14 = arith.addf %12, %13 : vector<8x128xf32>
    %c0_9 = arith.constant 0 : index
    %c0_10 = arith.constant 0 : index
    %15 = vector.load %arg3[%c0_9, %c0_10] : memref<8x128xf32, #tpu.memory_space<vmem>>, vector<8x128xf32>
    tpu.vector_store %arg3[%c0_9, %c0_10], %14 {strides = array<i32>} : memref<8x128xf32, #tpu.memory_space<vmem>>, vector<8x128xf32>,
    return
  }
  func.func @transform_0(%arg0: i32) -> (i32, i32) {
    %c0_i32 = arith.constant 0 : i32
    %c0_i32_0 = arith.constant 0 : i32
    return %arg0, %c0_i32 : i32, i32
  }
  func.func @transform_1(%arg0: i32) -> (i32, i32) {
    %c0_i32 = arith.constant 0 : i32
    %c0_i32_0 = arith.constant 0 : i32
    %c0_i32_1 = arith.constant 0 : i32
    return %c0_i32, %c0_i32_0 : i32, i32
  }
  func.func @transform_2(%arg0: i32) -> (i32, i32) {
    %c0_i32 = arith.constant 0 : i32
    %c0_i32_0 = arith.constant 0 : i32
    %c0_i32_1 = arith.constant 0 : i32
    return %c0_i32, %c0_i32_0 : i32, i32
  }
}

</mosaic_0001>

<bundles_post_ra>
// kernel: tpu_custom_call.1
= control target key start
LH: loop header
LB: loop body
LE: loop exit
PB: predicated region body
PF: predicated region fallthrough
CT: control target
= control target key end

     0   :  { %vm82_vm0 = vcmask 130048   ;;  %s416_s0 = inlined_call_operand.vmem [shape: bf16[128,16], index: 0, kind: input, shape index: {}]   ;;  %s417_s1 = inlined_call_operand.vmem [shape: bf16[16,128], index: 1, kind: input, shape index: {}]   ;;  %s418_s2 = inlined_call_operand.hbm [shape: f32[8,128], index: 2, kind: output, shape index: {}]  }
   0x1   :  { %v331_v0 = vld [vmem:[%s417_s1] sm:$0xff]   ;;  %v333_v2 = vld [vmem:[%s416_s0 + $0x8] sm:$0xff]   ;;  %v334_v3 = vld [vmem:[%s416_s0 + $0x10] sm:$0xff]  }
   0x2   :  { %v332_v1 = vld [vmem:[%s416_s0] sm:$0xff]   ;;  %309 = vmatprep.subr.bf16.mxu0 %v331_v0  ;;  %327 = vmatprep.subr.bf16.mxu1 %v331_v0  ;;  %v337_v5 = vld [vmem:[%s416_s0 + $0x28] sm:$0xff]   ;;  %v338_v6 = vld [vmem:[%s416_s0 + $0x30] sm:$0xff]  }
   0x3   :  { %310 = vmatpush3.bf16.msra.mxu0 %v331_v0  ;;  %311 = vmatprep.mubr.msk.bf16.mxu0 %vm82_vm0, %v332_v1  ;;  %v336_v4 = vld [vmem:[%s416_s0 + $0x20] sm:$0xff]  }
   0x4   :  { %328 = vmatpush3.bf16.msra.mxu1 %v331_v0  ;;  %319 = vmatprep.mubr.msk.bf16.mxu1 %vm82_vm0, %v336_v4 }
   0x6   :  { %312 = vmatmul.mubr.msk.bf16.vlgmr.msra.gmra.mxu0 %vm82_vm0, %v333_v2 }
   0x7   :  { %315 = vmatprep.mubr.msk.bf16.mxu0 %vm82_vm0, %v334_v3  ;;  %320 = vmatmul.mubr.msk.bf16.vlgmr.msra.gmra.mxu1 %vm82_vm0, %v337_v5 }
   0x8   :  { %323 = vmatprep.mubr.msk.bf16.mxu1 %vm82_vm0, %v338_v6 }
   0x9   :  { %7 = vsyncpa [#allocation3], 0  ;;  %v335_v7 = vld [vmem:[%s416_s0 + $0x18] sm:$0xff]   ;;  %vm263_vm1 = vcmask 1040384   ;;  %vm265_vm2 = vcmask 1041408  }
   0xa   :  { %v339_v8 = vld [vmem:[%s416_s0 + $0x38] sm:$0xff]   ;;  %s362_s0 = smov [#allocation2]  }
   0xb   :  { %s275_s26 = sshll.u32 %s362_s0, 4  ;;  %s276_s26 = int_to_ptr.vmem [resolvable:$true] %s275_s26 }
   0xc   :  { %s340_s27 = scalar_lea.vmem %s276_s26, 128  ;;  %p345_p1 = scmp.lt.s32.totalorder %s276_s26, %s276_s26 }
   0xd   :  { %p341_p0 = scmp.ne.s32.totalorder %s276_s26, %s340_s27  ;;  %p346_p2 = scmp.lt.s32.totalorder %s340_s27, %s340_s27 }
   0xe   :  { %316 = vmatmul.mubr.msk.bf16.gmra.mxu0 %vm82_vm0, %v335_v7 }
   0xf   :  { %324 = vmatmul.mubr.msk.bf16.gmra.mxu1 %vm82_vm0, %v339_v8  ;;  %p347_p3 = por %p346_p2, %p345_p1 }
  0x11   :  { %p348_p4 = pnand %p347_p3, %p341_p0 }
  0xc6   :  { %v313_v9 = vpop.f32.mrf.mxu0 }
  0xc7   :  { %v321_v11 = vpop.f32.mrf.mxu1  ;;  %v227_v20 = vmul.f32 %v313_v9, %v313_v9 }
  0xc8   :  { %v141_v10 = vpop.f32.mrf.mxu0  ;;  %v235_v51 = vmul.f32 %v321_v11, %v321_v11 }
  0xc9   :  { %v173_v13 = vpop.f32.mrf.mxu1  ;;  %v225_v15 = vmul.f32 %v141_v10, %v141_v10 }
  0xca   :  { %v314_v12 = vpop.f32.mrf.mxu0  ;;  %v233_v44 = vmul.f32 %v173_v13, %v173_v13 }
  0xcb   :  { %v322_v19 = vpop.f32.mrf.mxu1  ;;  %v228_v24 = vmul.f32 %v314_v12, %v314_v12 }
  0xcc   :  { %v144_v14 = vpop.f32.mrf.mxu0  ;;  %v236_v54 = vmul.f32 %v322_v19, %v322_v19 }
  0xcd   :  { %v204_v16 = vadd.f32 %v144_v14, %v141_v10  ;;  %v226_v17 = vmul.f32 %v144_v14, %v144_v14  ;;  %v176_v28 = vpop.f32.mrf.mxu1 }
  0xce   :  { %v317_v18 = vpop.f32.mrf.mxu0  ;;  %v234_v48 = vmul.f32 %v176_v28, %v176_v28 }
  0xcf   :  { %v205_v21 = vadd.f32 %v313_v9, %v204_v16  ;;  %v241_v22 = vadd.f32 %v226_v17, %v225_v15  ;;  %v325_v36 = vpop.f32.mrf.mxu1  ;;  %v231_v37 = vmul.f32 %v317_v18, %v317_v18 }
  0xd0   :  { %v157_v23 = vpop.f32.mrf.mxu0  ;;  %v239_v0 = vmul.f32 %v325_v36, %v325_v36 }
  0xd1   :  { %v242_v25 = vadd.f32 %v241_v22, %v227_v20  ;;  %v206_v26 = vadd.f32 %v314_v12, %v205_v21  ;;  %v229_v30 = vmul.f32 %v157_v23, %v157_v23  ;;  %v189_v43 = vpop.f32.mrf.mxu1 }
  0xd2   :  { %v318_v27 = vpop.f32.mrf.mxu0  ;;  %v237_v59 = vmul.f32 %v189_v43, %v189_v43 }
  0xd3   :  { %v207_v29 = vadd.f32 %v206_v26, %v157_v23  ;;  %v243_v31 = vadd.f32 %v242_v25, %v228_v24  ;;  %v232_v40 = vmul.f32 %v318_v27, %v318_v27  ;;  %v326_v50 = vpop.f32.mrf.mxu1 }
  0xd4   :  { %v160_v32 = vpop.f32.mrf.mxu0  ;;  %v240_v3 = vmul.f32 %v326_v50, %v326_v50 }
  0xd5   :  { %v244_v33 = vadd.f32 %v243_v31, %v229_v30  ;;  %v208_v34 = vadd.f32 %v207_v29, %v160_v32  ;;  %v230_v35 = vmul.f32 %v160_v32, %v160_v32  ;;  %v192_v57 = vpop.f32.mrf.mxu1 }
  0xd6   :  { %v238_v63 = vmul.f32 %v192_v57, %v192_v57 }
  0xd7   :  { %v209_v38 = vadd.f32 %v317_v18, %v208_v34  ;;  %v245_v39 = vadd.f32 %v244_v33, %v230_v35 }
  0xd9   :  { %v210_v41 = vadd.f32 %v318_v27, %v209_v38  ;;  %v246_v42 = vadd.f32 %v245_v39, %v231_v37 }
  0xdb   :  { %v247_v45 = vadd.f32 %v246_v42, %v232_v40  ;;  %v211_v46 = vadd.f32 %v210_v41, %v173_v13 }
  0xdd   :  { %v212_v47 = vadd.f32 %v211_v46, %v176_v28  ;;  %v248_v49 = vadd.f32 %v247_v45, %v233_v44 }
  0xdf   :  { %v213_v52 = vadd.f32 %v321_v11, %v212_v47  ;;  %v249_v53 = vadd.f32 %v248_v49, %v234_v48 }
  0xe1   :  { %v250_v55 = vadd.f32 %v249_v53, %v235_v51  ;;  %v214_v56 = vadd.f32 %v322_v19, %v213_v52 }
  0xe3   :  { %v215_v58 = vadd.f32 %v214_v56, %v189_v43  ;;  %v251_v60 = vadd.f32 %v250_v55, %v236_v54 }
  0xe5   :  { %v252_v61 = vadd.f32 %v251_v60, %v237_v59  ;;  %v216_v62 = vadd.f32 %v215_v58, %v192_v57 }
  0xe7   :  { %v217_v1 = vadd.f32 %v325_v36, %v216_v62  ;;  %v253_v2 = vadd.f32 %v252_v61, %v238_v63 }
  0xe9   :  { %v218_v4 = vadd.f32 %v326_v50, %v217_v1  ;;  %v254_v5 = vadd.f32 %v253_v2, %v239_v0 }
  0xeb   :  { %v219_v6 = vrot.slane %v218_v4, 4  ;;  %v255_v7 = vadd.f32 %v254_v5, %v240_v3 }
  0xed   :  { %v220_v8 = vadd.f32 %v219_v6, %v218_v4  ;;  %v256_v9 = vrot.slane %v255_v7, 4 }
  0xef   :  { %v221_v10 = vrot.slane %v220_v8, 2  ;;  %v257_v11 = vadd.f32 %v256_v9, %v255_v7 }
  0xf1   :  { %v222_v12 = vadd.f32 %v221_v10, %v220_v8  ;;  %v258_v13 = vrot.slane %v257_v11, 2 }
  0xf3   :  { %v223_v14 = vrot.slane %v222_v12, 1  ;;  %v259_v15 = vadd.f32 %v258_v13, %v257_v11 }
  0xf5   :  { %v260_v16 = vrot.slane %v259_v15, 1  ;;  %v224_v17 = vadd.f32 %v223_v14, %v222_v12 }
  0xf7   :  { %v261_v18 = vadd.f32 %v260_v16, %v259_v15 }
  0xf9   :  { %v264_v19 = vsel %vm263_vm1, %v224_v17, %v261_v18 }
  0xfa   :  { %v266_v20 = vsel %vm265_vm2, %v264_v19, 0.0 }
  0xfb   :  { %268 = vst [vmem:[#allocation2] sm:$0xff] %v266_v20 }
  0xfc   :  { %351 = shalt.err (!%p348_p4)
}
  0xfd   :  { %278 = dma.vmem_to_hbm [thread:$0]  %s276_s26, 128, %s418_s2, [#allocation3]  }
  0xfe   :  { %360 = dma.done.wait [#allocation3], 128  }
  0xff   :  { %361 = vsyncadd [#allocation3], 4294967168 }
 0x100   :  { %282 = vsyncpa [#allocation3], 1 }

</bundles_post_ra>
